<compile_context>
chip_gen: v6e
topology: v6e:2x2x1
jax: 0.10.0
libtpu: 0.0.40
codegen_flags: <defaults>
</compile_context>

<pallas_src>
import functools

import jax
import jax.numpy as jnp
from jax.experimental import pallas as pl
from jax.experimental.pallas import tpu as pltpu

_MIB = 1024 * 1024


def _round_up(x: int, m: int) -> int:
    return (x + m - 1) // m * m


def _vmem_capacity_bytes() -> int:
    try:
        return int(pltpu.get_tpu_info().vmem_capacity_bytes)
    except Exception:
        return 64 * _MIB  # conservative (v7x physical)


def _plan(n: int, c: int, itemsize: int):
    """Pick (tile_n, vmem_limit_bytes) from the chip's VMEM capacity."""
    cap = _vmem_capacity_bytes()
    # sublane alignment for the logits dtype (f32: 8, bf16: 16, int8/fp8: 32)
    row_align = 8 if itemsize >= 4 else (16 if itemsize == 2 else 32)
    c_phys = _round_up(c, 128)  # lane padding inside VMEM

    # f32-equivalent budget per logits block: double-buffered DMA + a handful of
    # full-tile f32 temporaries must fit comfortably under the scoped limit.
    block_budget = max(_MIB, min(8 * _MIB, cap // 12))   # ~8 MiB v5e/v6e, ~5.3 MiB v7x
    tile_n = max(row_align, (block_budget // (4 * c_phys)) // row_align * row_align)
    tile_n = min(tile_n, 16384)

    if n >= 4 * row_align:
        # guarantee >= 2 grid steps so the "parallel" axis can shard across
        # v7x's two TensorCores (and amortizes nothing extra elsewhere).
        tile_n = min(tile_n, _round_up((n + 1) // 2, row_align))
    tile_n = min(tile_n, _round_up(n, row_align))
    tile_n = max(row_align, tile_n)

    vmem_limit = int(max(32 * _MIB, min(cap * 3 // 4, 96 * _MIB)))
    return tile_n, vmem_limit


def _wsl_kernel(x_ref, t_ref, w_ref, o_ref, *, n_rows, tile_n):
    """Per-tile weighted cross-entropy partial sum via logsumexp.

    x_ref: (tile_n, C)  logits, native dtype (tail rows of edge block = garbage)
    t_ref: (tile_n, 1)  i32 target class per row (garbage on tail rows)
    w_ref: (1, C)       class weights (resident across the grid)
    o_ref: (8, 128)     f32; partial sum written to [0, 0], zeros elsewhere
    """
    i = pl.program_id(0)

    x = x_ref[...].astype(jnp.float32)            # in-kernel upcast (VPU slack)
    t = t_ref[...]                                # (tile_n, 1) i32
    w = w_ref[...].astype(jnp.float32)            # (1, C)
    tn, c = x.shape

    # one-hot compare reused for both the target logit and the target weight
    col = jax.lax.broadcasted_iota(jnp.int32, (tn, c), 1)
    hit = col == t                                # (tile_n, C) bool
    x_t = jnp.sum(jnp.where(hit, x, 0.0), axis=1, keepdims=True)   # x[i, t_i]
    w_t = jnp.sum(jnp.where(hit, w, 0.0), axis=1, keepdims=True)   # weights[t_i]

    # numerically stable log-sum-exp over the class (lane) dimension
    m = jnp.max(x, axis=1, keepdims=True)
    s = jnp.sum(jnp.exp(x - m), axis=1, keepdims=True)
    lse = m + jnp.log(s)

    # -w * log(softmax(x)[t]) == w * (logsumexp(x) - x[t])
    loss = w_t * (lse - x_t)                      # (tile_n, 1)

    # explicit tail-row mask against the static N: edge-block padding may hold
    # arbitrary garbage (even NaN); jnp.where selects 0.0 regardless.
    row = jax.lax.broadcasted_iota(jnp.int32, (tn, 1), 0)
    valid = (i * tile_n + row) < n_rows
    loss = jnp.where(valid, loss, 0.0)

    tile_sum = jnp.sum(loss, axis=0, keepdims=True)        # (1, 1)

    # lane-dense (8, 128) store: partial sum in [0, 0], exact zeros elsewhere,
    # so the wrapper can simply jnp.sum the whole output.
    r8 = jax.lax.broadcasted_iota(jnp.int32, (8, 128), 0)
    l128 = jax.lax.broadcasted_iota(jnp.int32, (8, 128), 1)
    o_ref[...] = jnp.where((r8 == 0) & (l128 == 0), tile_sum, 0.0)


def weight_softmax_loss(inputs, targets, weights, size_average=True):
    """inputs: (N, C), targets: (N,) int, weights: (C,) -> scalar f32."""
    n, c = inputs.shape
    assert targets.shape == (n,)
    assert weights.shape == (c,)
    # NOTE: targets must lie in [0, C), matching the torch scatter_ contract;
    # out-of-range targets select weight 0 / logit 0 silently (no scatter error).

    itemsize = jnp.dtype(inputs.dtype).itemsize
    tile_n, vmem_limit = _plan(n, c, itemsize)
    num_tiles = pl.cdiv(n, tile_n)

    t2 = targets.astype(jnp.int32).reshape(n, 1)
    w2 = weights.reshape(1, c)

    kernel = functools.partial(_wsl_kernel, n_rows=n, tile_n=tile_n)

    cost = pl.CostEstimate(
        flops=7 * n * c,
        transcendentals=n * c + n,
        bytes_accessed=(n * c * itemsize
                        + n * 4
                        + c * jnp.dtype(weights.dtype).itemsize
                        + num_tiles * 8 * 128 * 4),
    )

    per_tile = pl.pallas_call(
        kernel,
        out_shape=jax.ShapeDtypeStruct((num_tiles * 8, 128), jnp.float32),
        grid=(num_tiles,),
        in_specs=[
            pl.BlockSpec((tile_n, c), lambda i: (i, 0)),   # logits, native dtype, unpadded
            pl.BlockSpec((tile_n, 1), lambda i: (i, 0)),   # targets
            pl.BlockSpec((1, c), lambda i: (0, 0)),        # class weights (resident)
        ],
        out_specs=pl.BlockSpec((8, 128), lambda i: (i, 0)),
        compiler_params=pltpu.CompilerParams(
            dimension_semantics=("parallel",),
            vmem_limit_bytes=vmem_limit,
        ),
        cost_estimate=cost,
    )(inputs, t2, w2)

    total = jnp.sum(per_tile)                    # zeros everywhere except [8*i, 0]
    if size_average:
        return total / jnp.float32(n)
    return total


def _reference(inputs, targets, weights, size_average):
    x = inputs.astype(jnp.float32)
    p = jax.nn.softmax(x, axis=1)
    probs = p[jnp.arange(x.shape[0]), targets]
    w_sel = weights.astype(jnp.float32)[targets]
    per = -w_sel * jnp.log(probs)
    return jnp.mean(per) if size_average else jnp.sum(per)


if __name__ == "__main__":
    key = jax.random.PRNGKey(0)
    k1, k2, k3, k4, k5, k6 = jax.random.split(key, 6)

    # Case 1: batch=8, class_num=32 (f32, exact tile, no tail)
    N, C = 8, 32
    inputs = jax.random.normal(k1, (N, C), dtype=jnp.float32)
    targets = jax.random.randint(k2, (N,), 0, C, dtype=jnp.int32)
    weights = jax.random.uniform(k3, (C,), dtype=jnp.float32, minval=0.5, maxval=2.0)

    loss = weight_softmax_loss(inputs, targets, weights, size_average=True)
    jax.block_until_ready(loss)
    ref = _reference(inputs, targets, weights, True)
    assert jnp.allclose(loss, ref, rtol=1e-5, atol=1e-5), (loss, ref)

    loss_sum = weight_softmax_loss(inputs, targets, weights, size_average=False)
    jax.block_until_ready(loss_sum)
    ref_sum = _reference(inputs, targets, weights, False)
    assert jnp.allclose(loss_sum, ref_sum, rtol=1e-5, atol=1e-5), (loss_sum, ref_sum)

    # Case 2: N=70, C=40 (f32) — exercises the 2-tile parallel grid and the
    # tail-row masking of the final edge block.
    N2, C2 = 70, 40
    x2 = jax.random.normal(k4, (N2, C2), dtype=jnp.float32)
    t2 = jax.random.randint(k5, (N2,), 0, C2, dtype=jnp.int32)
    w2 = jax.random.uniform(k6, (C2,), dtype=jnp.float32, minval=0.5, maxval=2.0)
    l2 = weight_softmax_loss(x2, t2, w2, size_average=True)
    jax.block_until_ready(l2)
    r2 = _reference(x2, t2, w2, True)
    assert jnp.allclose(l2, r2, rtol=1e-5, atol=1e-5), (l2, r2)

    # Case 3: bf16 logits (native-dtype DMA + in-kernel f32 cast), tail rows masked.
    N3, C3 = 37, 128
    x3 = jax.random.normal(k4, (N3, C3), dtype=jnp.float32).astype(jnp.bfloat16)
    t3 = jax.random.randint(k5, (N3,), 0, C3, dtype=jnp.int32)
    w3 = jax.random.uniform(k6, (C3,), dtype=jnp.float32, minval=0.5, maxval=2.0)
    l3 = weight_softmax_loss(x3, t3, w3, size_average=False)
    jax.block_until_ready(l3)
    r3 = _reference(x3, t3, w3, False)
    assert jnp.allclose(l3, r3, rtol=1e-4, atol=1e-4), (l3, r3)

    print("KERNEL_OK")
</pallas_src>

<mosaic_0001>
module attributes {stable_mosaic.version = 11 : i64} {
  func.func @_wsl_kernel(%arg0: i32, %arg1: memref<8x32xf32, #tpu.memory_space<vmem>>, %arg2: memref<8x1xi32, #tpu.memory_space<vmem>>, %arg3: memref<1x32xf32, #tpu.memory_space<vmem>>, %arg4: memref<8x128xf32, #tpu.memory_space<vmem>>) attributes {dimension_semantics = [#tpu.dimension_semantics<parallel>], iteration_bounds = array<i64: 1>, scalar_prefetch = 0 : i64, scratch_operands = 0 : i64, tpu.core_type = #tpu.core_type<tc>, window_params = [{transform_indices = @transform_0, window_bounds = array<i64: 8, 32>}, {transform_indices = @transform_1, window_bounds = array<i64: 8, 1>}, {pipeline_mode = #tpu.pipeline_mode<synchronous>, transform_indices = @transform_2, window_bounds = array<i64: 1, 32>}, {transform_indices = @transform_3, window_bounds = array<i64: 8, 128>}]} {
    %c0 = arith.constant 0 : index
    %c0_0 = arith.constant 0 : index
    %0 = vector.load %arg1[%c0, %c0_0] : memref<8x32xf32, #tpu.memory_space<vmem>>, vector<8x32xf32>
    %c0_1 = arith.constant 0 : index
    %c0_2 = arith.constant 0 : index
    %1 = vector.load %arg2[%c0_1, %c0_2] : memref<8x1xi32, #tpu.memory_space<vmem>>, vector<8x1xi32>
    %c0_3 = arith.constant 0 : index
    %c0_4 = arith.constant 0 : index
    %2 = vector.load %arg3[%c0_3, %c0_4] : memref<1x32xf32, #tpu.memory_space<vmem>>, vector<1x32xf32>
    %3 = tpu.iota {dimensions = array<i32: 1>} : vector<8x32xi32>
    %4 = vector.broadcast %1 : vector<8x1xi32> to vector<8x32xi32>
    %5 = arith.cmpi eq, %3, %4 : vector<8x32xi32>
    %cst = arith.constant 0.000000e+00 : f32
    %6 = vector.broadcast %cst : f32 to vector<8x32xf32>
    %7 = arith.select %5, %0, %6 : vector<8x32xi1>, vector<8x32xf32>
    %cst_5 = arith.constant dense<0.000000e+00> : vector<8xf32>
    %8 = vector.multi_reduction <add>, %7, %cst_5 [1] : vector<8x32xf32> to vector<8xf32>
    %9 = vector.shape_cast %8 : vector<8xf32> to vector<8x1xf32>
    %cst_6 = arith.constant 0.000000e+00 : f32
    %10 = vector.shape_cast %2 : vector<1x32xf32> to vector<1x32xf32>
    %11 = vector.broadcast %10 : vector<1x32xf32> to vector<8x32xf32>
    %12 = vector.broadcast %cst_6 : f32 to vector<8x32xf32>
    %13 = arith.select %5, %11, %12 : vector<8x32xi1>, vector<8x32xf32>
    %cst_7 = arith.constant dense<0.000000e+00> : vector<8xf32>
    %14 = vector.multi_reduction <add>, %13, %cst_7 [1] : vector<8x32xf32> to vector<8xf32>
    %15 = vector.shape_cast %14 : vector<8xf32> to vector<8x1xf32>
    %cst_8 = arith.constant dense<0xFF800000> : vector<8xf32>
    %16 = vector.multi_reduction <maximumf>, %0, %cst_8 [1] : vector<8x32xf32> to vector<8xf32>
    %17 = vector.shape_cast %16 : vector<8xf32> to vector<8x1xf32>
    %18 = vector.broadcast %17 : vector<8x1xf32> to vector<8x32xf32>
    %19 = arith.subf %0, %18 : vector<8x32xf32>
    %20 = math.exp %19 : vector<8x32xf32>
    %cst_9 = arith.constant dense<0.000000e+00> : vector<8xf32>
    %21 = vector.multi_reduction <add>, %20, %cst_9 [1] : vector<8x32xf32> to vector<8xf32>
    %22 = vector.shape_cast %21 : vector<8xf32> to vector<8x1xf32>
    %23 = math.log %22 : vector<8x1xf32>
    %24 = arith.addf %17, %23 : vector<8x1xf32>
    %25 = arith.subf %24, %9 : vector<8x1xf32>
    %26 = arith.mulf %15, %25 : vector<8x1xf32>
    %27 = tpu.iota {dimensions = array<i32: 0>} : vector<8x1xi32>
    %c8_i32 = arith.constant 8 : i32
    %28 = arith.muli %arg0, %c8_i32 : i32
    %29 = vector.broadcast %28 : i32 to vector<8x1xi32>
    %30 = arith.addi %29, %27 : vector<8x1xi32>
    %c8_i32_10 = arith.constant 8 : i32
    %31 = vector.broadcast %c8_i32_10 : i32 to vector<8x1xi32>
    %32 = arith.cmpi slt, %30, %31 : vector<8x1xi32>
    %cst_11 = arith.constant 0.000000e+00 : f32
    %33 = vector.broadcast %cst_11 : f32 to vector<8x1xf32>
    %34 = arith.select %32, %26, %33 : vector<8x1xi1>, vector<8x1xf32>
    %cst_12 = arith.constant dense<0.000000e+00> : vector<1xf32>
    %35 = vector.multi_reduction <add>, %34, %cst_12 [0] : vector<8x1xf32> to vector<1xf32>
    %36 = vector.shape_cast %35 : vector<1xf32> to vector<1x1xf32>
    %37 = tpu.iota {dimensions = array<i32: 0>} : vector<8x128xi32>
    %38 = tpu.iota {dimensions = array<i32: 1>} : vector<8x128xi32>
    %c0_i32 = arith.constant 0 : i32
    %39 = vector.broadcast %c0_i32 : i32 to vector<8x128xi32>
    %40 = arith.cmpi eq, %37, %39 : vector<8x128xi32>
    %c0_i32_13 = arith.constant 0 : i32
    %41 = vector.broadcast %c0_i32_13 : i32 to vector<8x128xi32>
    %42 = arith.cmpi eq, %38, %41 : vector<8x128xi32>
    %43 = arith.andi %40, %42 : vector<8x128xi1>
    %cst_14 = arith.constant 0.000000e+00 : f32
    %44 = vector.shape_cast %36 : vector<1x1xf32> to vector<1x1xf32>
    %45 = vector.broadcast %44 : vector<1x1xf32> to vector<8x128xf32>
    %46 = vector.broadcast %cst_14 : f32 to vector<8x128xf32>
    %47 = arith.select %43, %45, %46 : vector<8x128xi1>, vector<8x128xf32>
    %c0_15 = arith.constant 0 : index
    %c0_16 = arith.constant 0 : index
    %48 = vector.load %arg4[%c0_15, %c0_16] : memref<8x128xf32, #tpu.memory_space<vmem>>, vector<8x128xf32>
    tpu.vector_store %arg4[%c0_15, %c0_16], %47 {strides = array<i32>} : memref<8x128xf32, #tpu.memory_space<vmem>>, vector<8x128xf32>,
    return
  }
  func.func @transform_0(%arg0: i32) -> (i32, i32) {
    %c0_i32 = arith.constant 0 : i32
    %c0_i32_0 = arith.constant 0 : i32
    return %arg0, %c0_i32 : i32, i32
  }
  func.func @transform_1(%arg0: i32) -> (i32, i32) {
    %c0_i32 = arith.constant 0 : i32
    %c0_i32_0 = arith.constant 0 : i32
    return %arg0, %c0_i32 : i32, i32
  }
  func.func @transform_2(%arg0: i32) -> (i32, i32) {
    %c0_i32 = arith.constant 0 : i32
    %c0_i32_0 = arith.constant 0 : i32
    %c0_i32_1 = arith.constant 0 : i32
    return %c0_i32, %c0_i32_0 : i32, i32
  }
  func.func @transform_3(%arg0: i32) -> (i32, i32) {
    %c0_i32 = arith.constant 0 : i32
    %c0_i32_0 = arith.constant 0 : i32
    return %arg0, %c0_i32 : i32, i32
  }
}

</mosaic_0001>

<bundles_post_ra>
// kernel: tpu_custom_call.1
= control target key start
LH: loop header
LB: loop body
LE: loop exit
PB: predicated region body
PF: predicated region fallthrough
CT: control target
= control target key end

     0   :  { %vm25_vm0 = vcmask 261120   ;;  %s153_s0 = inlined_call_operand.vmem [shape: f32[8,32], index: 0, kind: input, shape index: {}]   ;;  %s154_s1 = inlined_call_operand.vmem [shape: s32[8,1], index: 1, kind: input, shape index: {}]   ;;  %s155_s2 = inlined_call_operand.vmem [shape: f32[1,32], index: 2, kind: input, shape index: {}]   ;;  %s156_s3 = inlined_call_operand.hbm [shape: f32[8,128], index: 3, kind: output, shape index: {}]  }
   0x1   :  { %v15_v0 = vld [vmem:[%s153_s0] sm:$0xff] }
   0x2   :  { %8 = vsyncpa [#allocation3], 0  ;;  %v39_v1 = vsel %vm25_vm0, %v15_v0, -inf  ;;  %v115_v2 = vmov 0   ;;  %v16_v3 = vld [vmem:[%s154_s1] sm:$0xff]  ;;  %v18_v7 = vlaneseq  ;;  %s116_s1 = smov [#allocation2]  }
   0x3   :  { %88 = vset.pattern.permute.xlu0 %v115_v2  ;;  %v85_v13 = vld [vmem:[%s155_s2] ss:$0 sm:$0xff]  ;;  %s77_s2 = sshll.u32 %s116_s1, 4  ;;  %s78_s2 = int_to_ptr.vmem [resolvable:$true] %s77_s2 }
   0x4   :  { %40 = vmax.xlane.f32.xlu0 %v39_v1  ;;  %v19_v8 = vand.u32 127, %v18_v7  ;;  %v54_v27 = vshrl.u32 %v18_v7, 7  ;;  %s93_s17 = scalar_lea.vmem %s78_s2, 128  ;;  %p98_p1 = scmp.lt.s32.totalorder %s78_s2, %s78_s2 }
   0x5   :  { %p94_p0 = scmp.ne.s32.totalorder %s78_s2, %s93_s17  ;;  %p99_p2 = scmp.lt.s32.totalorder %s93_s17, %s93_s17 }
   0x6   :  { %vm66_vm2 = vcmp.eq.s32.totalorder %v54_v27, 0  ;;  %vm67_vm3 = vcmp.eq.s32.totalorder %v19_v8, 0 }
   0x7   :  { %vm68_vm4 = vmand %vm66_vm2, %vm67_vm3  ;;  %p100_p3 = por %p99_p2, %p98_p1 }
   0x9   :  { %p101_p4 = pnand %p100_p3, %p94_p0 }
  0x1a   :  { %21 = vperm.xlu0 %88, %v16_v3  }
  0x8d   :  { %v41_v4 = vpop.xlane.xlu0 %40 }
  0x8e   :  { %v42_v5 = vsub.f32 %v15_v0, %v41_v4 }
  0x90   :  { %v43_v6 = vmul.f32 1.442695, %v42_v5 }
  0x92   :  { %89 = vpow2.f32 %v43_v6 }
  0x95   :  { %v22_v9 = vpop.permute.xlu0 %21 }
  0x96   :  { %vm23_vm1 = vcmp.eq.s32.totalorder %v19_v8, %v22_v9 }
  0x97   :  { %v24_v11 = vsel %vm23_vm1, %v15_v0, 0.0  ;;  %v35_v15 = vsel %vm23_vm1, %v85_v13, 0.0 }
  0x98   :  { %v26_v14 = vsel %vm25_vm0, %v24_v11, 0.0  ;;  %v36_v16 = vsel %vm25_vm0, %v35_v15, 0.0 }
  0x9f   :  { %v90_v10 = vpop.eup %89 }
  0xa0   :  { %v45_v12 = vsel %vm25_vm0, %v90_v10, 0.0 }
  0xa1   :  { %46 = vadd.xlane.f32.xlu1 %v45_v12 }
  0xa5   :  { %27 = vadd.xlane.f32.xlu1 %v26_v14 }
  0xa9   :  { %37 = vadd.xlane.f32.xlu1 %v36_v16 }
 0x12a   :  { %v47_v17 = vpop.xlane.xlu1 %46 }
 0x12b   :  { %91 = vlog2.f32 %v47_v17 }
 0x12e   :  { %v28_v19 = vpop.xlane.xlu1 %27 }
 0x132   :  { %v38_v23 = vpop.xlane.xlu1 %37 }
 0x138   :  { %v92_v18 = vpop.eup %91 }
 0x139   :  { %v49_v20 = vmul.f32 0.6931472, %v92_v18 }
 0x13b   :  { %v50_v21 = vadd.f32 %v49_v20, %v41_v4 }
 0x13d   :  { %v51_v22 = vsub.f32 %v50_v21, %v28_v19 }
 0x13f   :  { %v52_v24 = vmul.f32 %v51_v22, %v38_v23 }
 0x141   :  { %v60_v25 = vrot.slane %v52_v24, 4 }
 0x143   :  { %v61_v26 = vadd.f32 %v60_v25, %v52_v24 }
 0x145   :  { %v62_v28 = vrot.slane %v61_v26, 2 }
 0x147   :  { %v63_v29 = vadd.f32 %v62_v28, %v61_v26 }
 0x149   :  { %v64_v30 = vrot.slane %v63_v29, 1 }
 0x14b   :  { %v65_v31 = vadd.f32 %v64_v30, %v63_v29 }
 0x14d   :  { %v69_v32 = vsel %vm68_vm4, %v65_v31, 0.0 }
 0x14e   :  { %70 = vst [vmem:[#allocation2] sm:$0xff] %v69_v32 }
 0x14f   :  { %104 = shalt.err (!%p101_p4)
}
 0x150   :  { %80 = dma.vmem_to_hbm [thread:$0]  %s78_s2, 128, %s156_s3, [#allocation3]  }
 0x151   :  { %113 = dma.done.wait [#allocation3], 128  }
 0x152   :  { %114 = vsyncadd [#allocation3], 4294967168 }
 0x153   :  { %84 = vsyncpa [#allocation3], 1 }

</bundles_post_ra>
